<compile_context>
chip_gen: v6e
topology: v6e:2x2x1
jax: 0.10.0
libtpu: 0.0.40
codegen_flags: <defaults>
</compile_context>

<pallas_src>
import jax
import jax.numpy as jnp
from jax.experimental import pallas as pl
from jax.experimental.pallas import tpu as pltpu

_MIB = 1024 * 1024


def _vmem_limit_bytes():
    """Scoped VMEM limit: <= half physical VMEM, capped at 64 MiB.

    v5e/v6e (128 MiB physical) -> 64 MiB; v7x (64 MiB physical) -> 32 MiB.
    Falls back to 32 MiB if the hardware query is unavailable.
    """
    try:
        cap = pltpu.get_tpu_info().vmem_capacity_bytes
        return int(min(64 * _MIB, cap // 2))
    except Exception:
        return 32 * _MIB


def _pick_tile(L, max_tl=1024):
    """Largest multiple of 128 that divides L (capped at max_tl); else whole L.

    Guarantees the spatial block is either 128-lane aligned or spans the full
    axis, so no wrapper-side jnp.pad / slicing (extra HBM round trips) is ever
    needed and the lane dimension stays dense.
    """
    if L % 128 != 0:
        return L  # single whole-L block; full-extent blocks are always legal
    n128 = L // 128
    best = 1
    for d in range(1, n128 + 1):
        if n128 % d == 0 and d * 128 <= max_tl:
            best = d
    return best * 128


# ----------------------------------------------------------------------------
# Kernel 1: batched, L-tiled projection  (P, C) @ (C, TL) -> (P, TL) x2
# ----------------------------------------------------------------------------
def _proj_kernel(proj_ref, true_ref, fake_ref, pt_ref, pf_ref):
    p = proj_ref[...]                                  # (P, C) bf16, resident
    # MXU accumulates in f32; store bf16 to halve output DMA + downstream
    # sort / L1 traffic (all of which is pure HBM-bandwidth work).
    pt_ref[0] = jnp.dot(p, true_ref[0],
                        preferred_element_type=jnp.float32).astype(pt_ref.dtype)
    pf_ref[0] = jnp.dot(p, fake_ref[0],
                        preferred_element_type=jnp.float32).astype(pf_ref.dtype)


def project_samples(projections, true_flat, fake_flat, *, max_tl=1024):
    """projections: (P, C) f32; {true,fake}_flat: (N, C, L) bf16 -> two (N, P, L) bf16."""
    N, C, L = true_flat.shape
    P = projections.shape[0]
    tl = _pick_tile(L, max_tl)

    proj_bf = projections.astype(jnp.bfloat16)

    out_sds = jax.ShapeDtypeStruct((N, P, L), jnp.bfloat16)
    return pl.pallas_call(
        _proj_kernel,
        out_shape=(out_sds, out_sds),
        grid_spec=pltpu.PrefetchScalarGridSpec(
            num_scalar_prefetch=0,
            grid=(N, L // tl),
            in_specs=[
                pl.BlockSpec((P, C), lambda n, l: (0, 0)),       # resident weights
                pl.BlockSpec((1, C, tl), lambda n, l: (n, 0, l)),
                pl.BlockSpec((1, C, tl), lambda n, l: (n, 0, l)),
            ],
            out_specs=[
                pl.BlockSpec((1, P, tl), lambda n, l: (n, 0, l)),
                pl.BlockSpec((1, P, tl), lambda n, l: (n, 0, l)),
            ],
        ),
        compiler_params=pltpu.CompilerParams(
            dimension_semantics=("parallel", "parallel"),
            vmem_limit_bytes=_vmem_limit_bytes(),
        ),
    )(proj_bf, true_flat, fake_flat)


# ----------------------------------------------------------------------------
# Kernel 2: independent per-(n, L-chunk) partial sums of |a - b|.
# Both grid axes are "parallel" (megacore-friendly on v7x even for small N);
# the tiny (N, n_chunks) partial output is reduced in f32 in JAX.
# ----------------------------------------------------------------------------
def _l1_partial_kernel(a_ref, b_ref, out_ref):
    d = a_ref[0].astype(jnp.float32) - b_ref[0].astype(jnp.float32)
    out_ref[0, 0, 0, 0] = jnp.sum(jnp.abs(d))


def l1_mean(a, b, *, max_tl=1024):
    """a, b: (N, P, L) bf16 (identically shaped) -> scalar f32 mean |a - b|."""
    N, P, L = a.shape
    tl = _pick_tile(L, max_tl)
    nl = L // tl

    partials = pl.pallas_call(
        _l1_partial_kernel,
        out_shape=jax.ShapeDtypeStruct((N, nl, 1, 1), jnp.float32),
        grid_spec=pltpu.PrefetchScalarGridSpec(
            num_scalar_prefetch=0,
            grid=(N, nl),
            in_specs=[
                pl.BlockSpec((1, P, tl), lambda n, l: (n, 0, l)),
                pl.BlockSpec((1, P, tl), lambda n, l: (n, 0, l)),
            ],
            out_specs=pl.BlockSpec((1, 1, 1, 1), lambda n, l: (n, l, 0, 0)),
        ),
        compiler_params=pltpu.CompilerParams(
            dimension_semantics=("parallel", "parallel"),
            vmem_limit_bytes=_vmem_limit_bytes(),
        ),
    )(a, b)

    return jnp.sum(partials) / jnp.float32(N * P * L)


# ----------------------------------------------------------------------------
# SWD forward (wrapper glue + the two Pallas kernels above).
# ----------------------------------------------------------------------------
def swd_forward(fake_samples, true_samples, projections):
    """fake/true: (N, C, H, W); projections: (P, C) L2-normalized rows (f32)."""
    N, C, H, W = true_samples.shape
    L = H * W
    # Single cast straight to bf16 at the kernel boundary (no extra f32 copy).
    true_flat = true_samples.reshape(N, C, L).astype(jnp.bfloat16)
    fake_flat = fake_samples.reshape(N, C, L).astype(jnp.bfloat16)

    projected_true, projected_fake = project_samples(
        projections, true_flat, fake_flat)

    # TODO(synk): per-row sort has no Mosaic/TPU Pallas lowering -> bf16 XLA sort.
    sorted_true = jnp.sort(projected_true, axis=2)
    sorted_fake = jnp.sort(projected_fake, axis=2)

    return l1_mean(sorted_true, sorted_fake)


def swd_reference(fake_samples, true_samples, projections):
    """Pure-JAX f32 reference for correctness checking."""
    N, C, H, W = true_samples.shape
    L = H * W
    t = true_samples.reshape(N, C, L).astype(jnp.float32)
    f = fake_samples.reshape(N, C, L).astype(jnp.float32)
    pt = jnp.einsum("pc,ncl->npl", projections, t)
    pf = jnp.einsum("pc,ncl->npl", projections, f)
    return jnp.mean(jnp.abs(jnp.sort(pt, axis=2) - jnp.sort(pf, axis=2)))


if __name__ == "__main__":
    # Small deterministic example consistent with the module: NCHW inputs.
    N, C, H, W = 2, 8, 16, 16
    P = C // 2  # num_projections

    key = jax.random.PRNGKey(0)
    k_fake, k_true, k_proj = jax.random.split(key, 3)

    fake = jax.random.normal(k_fake, (N, C, H, W), dtype=jnp.float32)
    true = jax.random.normal(k_true, (N, C, H, W), dtype=jnp.float32)

    # Deterministic stand-in for np.random.normal projections + F.normalize.
    proj = jax.random.normal(k_proj, (P, C), dtype=jnp.float32)
    proj = proj / jnp.linalg.norm(proj, axis=1, keepdims=True)

    loss = jax.block_until_ready(swd_forward(fake, true, proj))
    ref = jax.block_until_ready(swd_reference(fake, true, proj))

    # bf16 intermediates (matmul operands + sorted projections) vs f32 reference
    # -> loose-but-meaningful tolerance.
    assert jnp.allclose(loss, ref, rtol=4e-2, atol=4e-3), (loss, ref)
    print("KERNEL_OK")
</pallas_src>

<mosaic_0001>
module attributes {stable_mosaic.version = 11 : i64} {
  func.func @_proj_kernel(%arg0: i32, %arg1: i32, %arg2: memref<4x8xbf16, #tpu.memory_space<vmem>>, %arg3: memref<1x8x256xbf16, #tpu.memory_space<vmem>>, %arg4: memref<1x8x256xbf16, #tpu.memory_space<vmem>>, %arg5: memref<1x4x256xbf16, #tpu.memory_space<vmem>>, %arg6: memref<1x4x256xbf16, #tpu.memory_space<vmem>>) attributes {dimension_semantics = [#tpu.dimension_semantics<parallel>, #tpu.dimension_semantics<parallel>], iteration_bounds = array<i64: 2, 1>, scalar_prefetch = 0 : i64, scratch_operands = 0 : i64, tpu.core_type = #tpu.core_type<tc>, window_params = [{pipeline_mode = #tpu.pipeline_mode<synchronous>, transform_indices = @transform_0, window_bounds = array<i64: 4, 8>}, {transform_indices = @transform_1, window_bounds = array<i64: 1, 8, 256>}, {transform_indices = @transform_2, window_bounds = array<i64: 1, 8, 256>}, {transform_indices = @transform_3, window_bounds = array<i64: 1, 4, 256>}, {transform_indices = @transform_4, window_bounds = array<i64: 1, 4, 256>}]} {
    %c0 = arith.constant 0 : index
    %c0_0 = arith.constant 0 : index
    %0 = vector.load %arg2[%c0, %c0_0] : memref<4x8xbf16, #tpu.memory_space<vmem>>, vector<4x8xbf16>
    %c0_1 = arith.constant 0 : index
    %c0_2 = arith.constant 0 : index
    %c0_3 = arith.constant 0 : index
    %1 = vector.load %arg3[%c0_1, %c0_2, %c0_3] : memref<1x8x256xbf16, #tpu.memory_space<vmem>>, vector<1x8x256xbf16>
    %2 = vector.shape_cast %1 : vector<1x8x256xbf16> to vector<8x256xbf16>
    %cst = arith.constant dense<0.000000e+00> : vector<4x256xf32>
    %3 = tpu.matmul %0, %2, %cst {dimension_numbers = #tpu.dot_dimension_numbers<[1], [0], [0], [1], [0, 0, 1, 1], [], []>} : vector<4x8xbf16>, vector<8x256xbf16>, vector<4x256xf32> -> vector<4x256xf32>
    %4 = arith.truncf %3 : vector<4x256xf32> to vector<4x256xbf16>
    %c0_4 = arith.constant 0 : index
    %c0_5 = arith.constant 0 : index
    %c0_6 = arith.constant 0 : index
    %5 = vector.load %arg5[%c0_4, %c0_5, %c0_6] : memref<1x4x256xbf16, #tpu.memory_space<vmem>>, vector<1x4x256xbf16>
    %6 = vector.shape_cast %5 : vector<1x4x256xbf16> to vector<4x256xbf16>
    %7 = vector.shape_cast %4 : vector<4x256xbf16> to vector<1x4x256xbf16>
    tpu.vector_store %arg5[%c0_4, %c0_5, %c0_6], %7 {strides = array<i32>} : memref<1x4x256xbf16, #tpu.memory_space<vmem>>, vector<1x4x256xbf16>,
    %c0_7 = arith.constant 0 : index
    %c0_8 = arith.constant 0 : index
    %c0_9 = arith.constant 0 : index
    %8 = vector.load %arg4[%c0_7, %c0_8, %c0_9] : memref<1x8x256xbf16, #tpu.memory_space<vmem>>, vector<1x8x256xbf16>
    %9 = vector.shape_cast %8 : vector<1x8x256xbf16> to vector<8x256xbf16>
    %cst_10 = arith.constant dense<0.000000e+00> : vector<4x256xf32>
    %10 = tpu.matmul %0, %9, %cst_10 {dimension_numbers = #tpu.dot_dimension_numbers<[1], [0], [0], [1], [0, 0, 1, 1], [], []>} : vector<4x8xbf16>, vector<8x256xbf16>, vector<4x256xf32> -> vector<4x256xf32>
    %11 = arith.truncf %10 : vector<4x256xf32> to vector<4x256xbf16>
    %c0_11 = arith.constant 0 : index
    %c0_12 = arith.constant 0 : index
    %c0_13 = arith.constant 0 : index
    %12 = vector.load %arg6[%c0_11, %c0_12, %c0_13] : memref<1x4x256xbf16, #tpu.memory_space<vmem>>, vector<1x4x256xbf16>
    %13 = vector.shape_cast %12 : vector<1x4x256xbf16> to vector<4x256xbf16>
    %14 = vector.shape_cast %11 : vector<4x256xbf16> to vector<1x4x256xbf16>
    tpu.vector_store %arg6[%c0_11, %c0_12, %c0_13], %14 {strides = array<i32>} : memref<1x4x256xbf16, #tpu.memory_space<vmem>>, vector<1x4x256xbf16>,
    return
  }
  func.func @transform_0(%arg0: i32, %arg1: i32) -> (i32, i32) {
    %c0_i32 = arith.constant 0 : i32
    %c0_i32_0 = arith.constant 0 : i32
    %c0_i32_1 = arith.constant 0 : i32
    return %c0_i32, %c0_i32_0 : i32, i32
  }
  func.func @transform_1(%arg0: i32, %arg1: i32) -> (i32, i32, i32) {
    %c0_i32 = arith.constant 0 : i32
    %c0_i32_0 = arith.constant 0 : i32
    return %arg0, %c0_i32, %arg1 : i32, i32, i32
  }
  func.func @transform_2(%arg0: i32, %arg1: i32) -> (i32, i32, i32) {
    %c0_i32 = arith.constant 0 : i32
    %c0_i32_0 = arith.constant 0 : i32
    return %arg0, %c0_i32, %arg1 : i32, i32, i32
  }
  func.func @transform_3(%arg0: i32, %arg1: i32) -> (i32, i32, i32) {
    %c0_i32 = arith.constant 0 : i32
    %c0_i32_0 = arith.constant 0 : i32
    return %arg0, %c0_i32, %arg1 : i32, i32, i32
  }
  func.func @transform_4(%arg0: i32, %arg1: i32) -> (i32, i32, i32) {
    %c0_i32 = arith.constant 0 : i32
    %c0_i32_0 = arith.constant 0 : i32
    return %arg0, %c0_i32, %arg1 : i32, i32, i32
  }
}

</mosaic_0001>

<bundles_post_ra>
// kernel: tpu_custom_call.1
= control target key start
LH: loop header
LB: loop body
LE: loop exit
PB: predicated region body
PF: predicated region fallthrough
CT: control target
= control target key end

     0   :  { %10 = vsyncpa [#allocation3], 0  ;;  %s1213_s0 = inlined_call_operand.hbm [shape: bf16[4,8], index: 0, kind: input, shape index: {}]   ;;  %s1214_s1 = inlined_call_operand.hbm [shape: bf16[2,8,256], index: 1, kind: input, shape index: {}]   ;;  %s1215_s2 = inlined_call_operand.hbm [shape: bf16[2,8,256], index: 2, kind: input, shape index: {}]   ;;  %s1216_s3 = inlined_call_operand.hbm [shape: bf16[2,4,256], index: 3, kind: output, shape index: {0}]   ;;  %s1217_s4 = inlined_call_operand.hbm [shape: bf16[2,4,256], index: 4, kind: output, shape index: {1}]  }
   0x1   :  { %11 = vsyncpa [#allocation6], 0 }
   0x2   :  { %13 = vsyncpa [#allocation6 + $0x1], 0 }
   0x3   :  { %14 = vsyncpa [#allocation4], 0 }
   0x4   :  { %16 = vsyncpa [#allocation4 + $0x1], 0 }
   0x5   :  { %17 = vsyncpa [#allocation10], 0 }
   0x6   :  { %19 = vsyncpa [#allocation10 + $0x1], 0  ;;  %s992_s15 = smov 0   ;;  %s994_s16 = smov 0  }
   0x7   :  { %s996_s17 = smov 0   ;;  %s998_s18 = smov 0  }
   0x8   :  { %s1000_s19 = smov 0   ;;  %s1002_s20 = smov 0  }
   0x9 LB: > { %s37_s21 = sadd.s32 1, %s955_s19  ;;  %s67_s22 = sadd.s32 1, %s947_s17  ;;  %s959_s20 = sphi %s1002_s20, %s25_s20   ;;  %s955_s19 = sphi %s1000_s19, %s1238_s19   ;;  %s951_s18 = sphi %s998_s18, %s1237_s18   ;;  %s947_s17 = sphi %s996_s17, %s1236_s17   ;;  %s943_s16 = sphi %s994_s16, %s1235_s16   ;;  %s939_s15 = sphi %s992_s15, %s1234_s15  }
   0xa   : > { %p39_p0 = scmp.ge.s32.totalorder %s37_s21, 2  ;;  %p74_p1 = scmp.ne.s32.totalorder %s947_s17, %s943_s16 }
   0xb   : > { %p75_p2 = scmp.eq.s32.totalorder %s959_s20, 0  ;;  %p706_p5 = scmp.lt.s32.totalorder %s959_s20, 2 }
   0xc   : > { %s1240_s21 = smov (%p39_p0, %s37_s21), 0  ;;  %s199_s24 = sand.u32 1, %s959_s20  }
   0xd   : > { %p76_p4 = por %p75_p2, %p74_p1  ;;  %s62_s23 = ssub.s32 %s955_s19, %s1240_s21 }
   0xe   : > { %p65_p6 = scmp.eq.s32.totalorder %s62_s23, 0  ;;  %s201_s25 = sand.u32 1, %s947_s17  }
   0xf   : > { %s671_s26 = sshll.u32 %s955_s19, 7  ;;  %s1042_s28 = sshll.u32 %s201_s25, 3 }
  0x10   : > { %s1040_s27 = scalar_select %p65_p6, %s947_s17, %s67_s22  }
  0x11   : > { %s211_s5 = scalar_lea.hbm %s1214_s1, %s671_s26  ;;  %p1049_p7 = pnand %p706_p5, %p76_p4 }
  0x12   : > { %s203_s7 = scalar_lea.vmem [#allocation5], %s1042_s28  ;;  %s1054_s9 = scalar_lea.sflag [#allocation6], %s199_s24 }
  0x13   : > { %s213_s8 = sshll.u32 %s203_s7, 4  ;;  %p765_p8 = pneg %p1049_p7  ;;  %s214_s8 = int_to_ptr.vmem [resolvable:$true] %s213_s8 }
  0x14   : > { %s776_s10 = scalar_lea.vmem %s214_s8, 128  ;;  %s961_s11 = smov [#allocation5]  }
  0x15   : > { %p777_p9 = scmp.ne.s32.totalorder %s214_s8, %s776_s10  ;;  %s781_s12 = sshll.u32 %s961_s11, 4  ;;  %s782_s12 = int_to_ptr.vmem [resolvable:$false] %s781_s12 }
  0x16   : > { %s783_s13 = scalar_lea.vmem %s782_s12, 256  ;;  %p784_p12 = scmp.lt.s32.totalorder %s214_s8, %s782_s12 }
  0x17   : > { %p779_p10 = pnand %p777_p9, %p765_p8  ;;  %p785_p13 = scmp.lt.s32.totalorder %s783_s13, %s776_s10 }
  0x19   : > { %p780_p11 = pneg %p779_p10  ;;  %p786_p0 = por %p785_p13, %p784_p12 }
  0x1b   : > { %p787_p2 = pnand %p786_p0, %p780_p11 }
  0x1d   : > { %790 = shalt.err (!%p787_p2)
}
  0x1e   : > { %694 = dma.hbm_to_vmem [thread:$0]  (!%p1049_p7), %s211_s5, 128, %s214_s8, %s1054_s9  }
  0x1f   : > { %s1065_s14 = sadd.s32 4294967295, %s959_s20   ;;  %s635_s22 = sadd.s32 4294967294, %s959_s20  }
  0x20   : > { %p80_p4 = scmp.ne.s32.totalorder %s943_s16, %s939_s15  ;;  %p1218_p5 = scmp.eq.s32.totalorder %s1065_s14, 0 }
  0x21   : > { %p134_p6 = scmp.eq.s32.totalorder %s1065_s14, 1  ;;  %p140_p9 = scmp.eq.s32.totalorder %s635_s22, 1 }
  0x22   : > { %p636_p10 = scmp.ge.s32.totalorder %s959_s20, 1  ;;  %p1075_p11 = por %p1218_p5, %p80_p4 }
  0x23   : > { %p1082_p12 = por %p134_p6, %p74_p1  ;;  %p1086_p13 = por %p140_p9, %p80_p4 }
  0x24   : > { %s1222_s23 = scalar_select %p1075_p11, 1, 0 }
  0x25   : > { %s1223_s24 = scalar_select %p1082_p12, 1, 0 }
  0x26   : > { %s1224_s25 = scalar_select %p1086_p13, 1, 0 }
  0x27   : > { %p175_p0 = scmp.lt.s32.totalorder %s959_s20, 3  ;;  %s232_s5 = scalar_lea.hbm %s1215_s2, %s671_s26 }
  0x28   : > { %s962_s8 = smov [#allocation2]   ;;  %s224_s11 = scalar_lea.vmem [#allocation7], %s1042_s28 }
  0x29   : > { %p1096_p2 = pnand %p636_p10, %p175_p0  ;;  %s188_s10 = sshll.u32 %s962_s8, 4  ;;  %s189_s10 = int_to_ptr.vmem [resolvable:$true] %s188_s10 }
  0x2a   : > { %s234_s12 = sshll.u32 %s224_s11, 4  ;;  %s963_s22 = smov [#allocation7]   ;;  %s235_s12 = int_to_ptr.vmem [resolvable:$true] %s234_s12 }
  0x2b   : > { %s804_s13 = scalar_lea.vmem %s235_s12, 128  ;;  %s809_s26 = sshll.u32 %s963_s22, 4  ;;  %s810_s26 = int_to_ptr.vmem [resolvable:$false] %s809_s26 }
  0x2c   : > { %p805_p4 = scmp.ne.s32.totalorder %s235_s12, %s804_s13  ;;  %s811_s29 = scalar_lea.vmem %s810_s26, 256 }
  0x2d   : > { %p812_p10 = scmp.lt.s32.totalorder %s235_s12, %s810_s26  ;;  %p813_p0 = scmp.lt.s32.totalorder %s811_s29, %s804_s13 }
  0x2e   : > { %p807_p6 = pnand %p805_p4, %p765_p8 }
  0x2f   : > { %p814_p3 = por %p813_p0, %p812_p10 }
  0x30   : > { %p808_p9 = pneg %p807_p6 }
  0x32   : > { %p815_p5 = pnand %p814_p3, %p808_p9 }
  0x34   : > { %818 = shalt.err (!%p815_p5)
}
  0x35   : > { %697 = dma.hbm_to_vmem [thread:$0]  (!%p1049_p7), %s232_s5, 128, %s235_s12, %s1054_s9  }
  0x36   : > { %p1226_p1 = scmp.eq.s32.totalorder %s1065_s14, 0  ;;  %p1227_p8 = pneg %p1096_p2 }
  0x37   : > { %s830_s28 = scalar_lea.vmem %s189_s10, 32  ;;  %p838_p0 = scmp.lt.s32.totalorder %s189_s10, %s189_s10 }
  0x38   : > { %p688_p4 = pnand %p1227_p8, %p1226_p1  ;;  %p831_p13 = scmp.ne.s32.totalorder %s189_s10, %s830_s28 }
  0x39   : > { %p839_p10 = scmp.lt.s32.totalorder %s830_s28, %s830_s28 }
  0x3a   : > { %p821_p6 = pneg %p688_p4 }
  0x3b   : > { %p840_p3 = por %p839_p10, %p838_p0 }
  0x3c   : > { %p833_p12 = pnand %p831_p13, %p821_p6 }
  0x3e   : > { %p834_p11 = pneg %p833_p12 }
  0x40   : > { %p841_p5 = pnand %p840_p3, %p834_p11 }
  0x42   : > { %844 = shalt.err (!%p841_p5)
}
  0x43   : > { %690 = dma.hbm_to_vmem [thread:$0]  (!%p688_p4), %s1213_s0, 32, %s189_s10, [#allocation3]  }
  0x44   : > { %243 = sbr.rel (%p1096_p2) target bundleno = 320 (0x140), region = 32  ;;  %p1228_p7 = scmp.eq.s32.totalorder (!%p1096_p2), %s1065_s14, 0 }
  0x49   : > { %922 = dma.done.wait (%p1228_p7), [#allocation3], 32   ;;  %p1229_p1 = pmov %p1228_p7 }
  0x4a   : > { %s249_s9 = sand.u32 1, %s1065_s14   ;;  %s1125_s5 = sand.u32 1, %s943_s16  }
  0x4b   : > { %924 = vsyncadd (%p1229_p1), [#allocation3], 4294967264  ;;  %s647_s8 = sshll.u32 %s1125_s5, 3  ;;  %s250_s11 = scalar_lea.sflag [#allocation6], %s249_s9 }
  0x4c   : > { %s253_s12 = scalar_lea.vmem [#allocation5], %s647_s8  ;;  %p1230_p11 = scmp.ne.s32.totalorder %s1222_s23, 0 }
  0x4e   : > { %926 = dma.done.wait (%p1230_p11), %s250_s11, 256  }
  0x4f   : > { %928 = vsyncadd (%p1230_p11), %s250_s11, 4294967040  ;;  %v964_v0 = vmov 0   ;;  %v303_v1 = vld [vmem:[%s253_s12] sm:$0xff]  ;;  %vm313_vm0 = vcmask 1043456   ;;  %s262_s7 = scalar_lea.vmem [#allocation7], %s647_s8  ;;  %vm309_vm1 = vcmask 64512  }
  0x50   : > { %352 = vmatprep.mubr.bf16.mxu0 %v964_v0  ;;  %419 = vmatprep.mubr.bf16.mxu1 %v964_v0  ;;  %v375_v2 = vld [vmem:[%s262_s7] sm:$0xff]  ;;  %v652_v3 = vcombine.high %v303_v1, %v303_v1  ;;  %v651_v5 = vcombine.low %v303_v1, %v303_v1  ;;  %s649_s14 = sshll.u32 %s1125_s5, 2  ;;  %s673_s23 = sshll.u32 %s951_s18, 6 }
  0x51   : > { %v658_v4 = vcombine.high %v375_v2, %v375_v2  ;;  %v657_v6 = vcombine.low %v375_v2, %v375_v2  ;;  %v302_v9 = vld [vmem:[#allocation2] sm:$0x3]  ;;  %s289_s10 = scalar_lea.vmem [#allocation8], %s649_s14  ;;  %s296_s22 = scalar_lea.vmem [#allocation9], %s649_s14 }
  0x52   : > { %653 = vmatprep.subr.msk.bf16.mxu0 %vm313_vm0, %v652_v3  ;;  %v315_v7 = vsel %vm313_vm0, %v651_v5, 0  ;;  %s464_s13 = sshll.u32 %s289_s10, 4  ;;  %s480_s26 = sshll.u32 %s296_s22, 4  ;;  %s1139_s13 = int_to_ptr.vmem [resolvable:$true] %s464_s13  ;;  %s1146_s26 = int_to_ptr.vmem [resolvable:$true] %s480_s26 }
  0x53   : > { %659 = vmatprep.subr.msk.bf16.mxu1 %vm313_vm0, %v658_v4  ;;  %v382_v8 = vsel %vm313_vm0, %v657_v6, 0  ;;  %335 = vmatpush1.bf16.msra.mxu0 %v315_v7  ;;  %s1137_s6 = scalar_lea.hbm %s1216_s3, %s673_s23  ;;  %s1144_s9 = scalar_lea.hbm %s1217_s4, %s673_s23 }
  0x54   : > { %402 = vmatpush1.bf16.msra.mxu1 %v382_v8  ;;  %s443_s8 = scalar_lea.sflag [#allocation4], %s1125_s5  ;;  %s845_s11 = scalar_lea.vmem %s1139_s13, 64 }
  0x55   : > { %p846_p12 = scmp.ne.s32.totalorder %s1139_s13, %s845_s11  ;;  %p1231_p13 = scmp.ne.s32.totalorder %s1223_s24, 0 }
  0x56   : > { %654 = vmatmul.mubr.msk.bf16.vlgmr.msra.gmra.mxu0 %vm309_vm1, %v302_v9  ;;  %s965_s12 = smov [#allocation8]  }
  0x57   : > { %660 = vmatmul.mubr.msk.bf16.vlgmr.msra.gmra.mxu1 %vm309_vm1, %v302_v9  ;;  %p847_p2 = pnand %p846_p12, %p1231_p13  ;;  %s849_s7 = sshll.u32 %s965_s12, 4  ;;  %s850_s7 = int_to_ptr.vmem [resolvable:$false] %s849_s7 }
  0x58   : > { %s851_s14 = scalar_lea.vmem %s850_s7, 128  ;;  %p852_p8 = scmp.lt.s32.totalorder %s1139_s13, %s850_s7 }
  0x59   : > { %p848_p9 = pneg %p847_p2  ;;  %p853_p4 = scmp.lt.s32.totalorder %s851_s14, %s845_s11 }
  0x5b   : > { %p854_p6 = por %p853_p4, %p852_p8 }
  0x5d   : > { %p855_p0 = pnand %p854_p6, %p848_p9 }
 0x116   : > { %v354_v10 = vpop.f32.mrf.mxu0 }
 0x117   : > { %v421_v11 = vpop.f32.mrf.mxu1 }
 0x118   : > { %v356_v12 = vpop.f32.mrf.mxu0 }
 0x119   : > { %v423_v13 = vpop.f32.mrf.mxu1  ;;  %v655_v14 = vpack.c.bf16 %v356_v12, %v354_v10 }
 0x11a   : > { %v661_v15 = vpack.c.bf16 %v423_v13, %v421_v11  ;;  %v358_v16 = vpop.f32.mrf.mxu0 }
 0x11b   : > { %v425_v17 = vpop.f32.mrf.mxu1  ;;  %656 = vst.sshfl [vmem:[%s289_s10] sm:$0x33 pattern:$0x76325410] %v655_v14 }
 0x11c   : > { %662 = vst.sshfl [vmem:[%s296_s22] sm:$0x33 pattern:$0x76325410] %v661_v15  ;;  %v359_v18 = vpop.f32.mrf.mxu0 }
 0x11d   : > { %v426_v19 = vpop.f32.mrf.mxu1 }
 0x11e   : > { %858 = shalt.err (!%p855_p0)
}
 0x11f   : > { %s859_s23 = scalar_lea.hbm %s1137_s6, 64  ;;  %s863_s29 = scalar_lea.hbm %s1216_s3, 128 }
 0x120   : > { %p860_p10 = scmp.ne.s32.totalorder %s1137_s6, %s859_s23  ;;  %p864_p7 = scmp.lt.s32.totalorder %s1137_s6, %s1216_s3 }
 0x121   : > { %p865_p1 = scmp.lt.s32.totalorder %s863_s29, %s859_s23 }
 0x122   : > { %p861_p3 = pnand %p860_p10, %p1231_p13 }
 0x123   : > { %p866_p11 = por %p865_p1, %p864_p7 }
 0x124   : > { %p862_p5 = pneg %p861_p3 }
 0x126   : > { %p867_p12 = pnand %p866_p11, %p862_p5 }
 0x128   : > { %870 = shalt.err (!%p867_p12)
}
 0x129   : > { %683 = dma.vmem_to_hbm [thread:$0]  (%p1231_p13), %s1139_s13, 64, %s1137_s6, %s443_s8  }
 0x12a   : > { %s448_s30 = scalar_lea.sflag [#allocation10], %s1125_s5  ;;  %s871_s11 = scalar_lea.vmem %s1146_s26, 64 }
 0x12b   : > { %p872_p2 = scmp.ne.s32.totalorder %s1146_s26, %s871_s11  ;;  %s966_s12 = smov [#allocation9]  }
 0x12c   : > { %s875_s7 = sshll.u32 %s966_s12, 4  ;;  %s876_s7 = int_to_ptr.vmem [resolvable:$false] %s875_s7 }
 0x12d   : > { %p873_p9 = pnand %p872_p2, %p1231_p13  ;;  %s877_s14 = scalar_lea.vmem %s876_s7, 128 }
 0x12e   : > { %p878_p4 = scmp.lt.s32.totalorder %s1146_s26, %s876_s7  ;;  %p879_p6 = scmp.lt.s32.totalorder %s877_s14, %s871_s11 }
 0x12f   : > { %p874_p8 = pneg %p873_p9 }
 0x130   : > { %p880_p0 = por %p879_p6, %p878_p4 }
 0x132   : > { %p881_p10 = pnand %p880_p0, %p874_p8 }
 0x134   : > { %884 = shalt.err (!%p881_p10)
}
 0x135   : > { %s885_s13 = scalar_lea.hbm %s1144_s9, 64  ;;  %s889_s8 = scalar_lea.hbm %s1217_s4, 128 }
 0x136   : > { %p886_p3 = scmp.ne.s32.totalorder %s1144_s9, %s885_s13  ;;  %p890_p1 = scmp.lt.s32.totalorder %s1144_s9, %s1217_s4 }
 0x137   : > { %p891_p11 = scmp.lt.s32.totalorder %s889_s8, %s885_s13 }
 0x138   : > { %p887_p5 = pnand %p886_p3, %p1231_p13 }
 0x139   : > { %p892_p12 = por %p891_p11, %p890_p1 }
 0x13a   : > { %p888_p7 = pneg %p887_p5 }
 0x13c   : > { %p893_p2 = pnand %p892_p12, %p888_p7 }
 0x13e   : > { %896 = shalt.err (!%p893_p2)
}
 0x13f   : > { %684 = dma.vmem_to_hbm [thread:$0]  (%p1231_p13), %s1146_s26, 64, %s1144_s9, %s448_s30  }
 0x140 PF: > { %s492_s22 = sand.u32 1, %s939_s15   ;;  %p1232_p9 = scmp.ne.s32.totalorder %s1224_s25, 0 }
 0x141   : > { %p1233_p8 = scmp.ge.s32.totalorder %s959_s20, 2  ;;  %s493_s29 = scalar_lea.sflag [#allocation4], %s492_s22 }
 0x143   : > { %p699_p4 = pnand %p1233_p8, %p1232_p9 }
 0x145   : > { %p700_p6 = pneg %p699_p4 }
 0x147   : > { %930 = dma.done.wait (%p700_p6), %s493_s29, 64  }
 0x148   : > { %932 = vsyncadd (%p700_p6), %s493_s29, 4294967232  ;;  %s502_s28 = scalar_lea.sflag [#allocation10], %s492_s22 }
 0x149   : > { %934 = dma.done.wait (%p700_p6), %s502_s28, 64  }
 0x14a   : > { %936 = vsyncadd (%p700_p6), %s502_s28, 4294967232  ;;  %s25_s20 = sadd.s32 1, %s959_s20   ;;  %s1234_s15 = smov %s943_s16 }
 0x14b   : > { %p22_p0 = scmp.ge.s32.totalorder %s25_s20, 4   ;;  %s1235_s16 = smov %s947_s17 }
 0x14c   : > { %s1236_s17 = smov %s1040_s27  ;;  %s1237_s18 = smov %s955_s19 }
 0x14d   : > { %s1238_s19 = smov %s1240_s21  ;;  %24 = sbr.rel (!%p22_p0) target bundleno = 9 (0x9), region = 110 }
 0x152   :  { %507 = vsyncpa [#allocation3], 1 }
 0x153   :  { %509 = vsyncpa [#allocation3 + $0x1], 1 }
 0x154   :  { %510 = vsyncpa [#allocation6], 1 }
 0x155   :  { %512 = vsyncpa [#allocation6 + $0x1], 1 }
 0x156   :  { %513 = vsyncpa [#allocation4], 1 }
 0x157   :  { %515 = vsyncpa [#allocation4 + $0x1], 1 }
 0x158   :  { %516 = vsyncpa [#allocation10], 1 }
 0x159   :  { %518 = vsyncpa [#allocation10 + $0x1], 1 }

</bundles_post_ra>
